<compile_context>
chip_gen: v6e
topology: v6e:2x2x1
jax: 0.10.0
libtpu: 0.0.40
codegen_flags: <defaults>
</compile_context>

<pallas_src>
import jax
import jax.numpy as jnp
from jax.experimental import pallas as pl
from jax.experimental.pallas import tpu as pltpu


# ---------------------------------------------------------------------------
# Config (small synthetic sizes consistent with the module's shapes)
# ---------------------------------------------------------------------------
VOCAB_SZ = 64
WORD_DIM = 32          # conf.word_dimension
FILTERS = 16           # conf.filters_num
KERNEL_SIZE = 3        # conf.kernel_size
EMB_DIM = 32           # conf.embedding_dim
NUM_USERS = 8
NUM_ITEMS = 8
DOC_LEN = 16
BATCH = 2
FM_K = 10              # fm_V second dim


# ---------------------------------------------------------------------------
# Fused kernel: gather + conv + ReLU + max-pool + fc (both towers) + FM head
# ---------------------------------------------------------------------------
def deepconn_fused_kernel(idx_ref, emb_ref, cw_ref, cb_ref, fw_ref, fb_ref,
                          fm_ref, fmb_ref, label_ref,
                          pred_ref, rloss_ref, mse_ref):
    # idx_ref   : (B*L, 2) int32   col 0 = user doc word ids, col 1 = item
    # emb_ref   : (2V, 2D)         block-diag [user_emb | item_emb]
    # cw_ref    : (K*2D, 2F)       block-structured im2col conv weights
    # cb_ref    : (1, 2F)          conv biases [user | item]
    # fw_ref    : (2F, 2E)         block-diag fc_linear weights
    # fb_ref    : (1, 2E)          fc_linear biases [user | item]
    # fm_ref    : (2E, 1+2*FM_K)   [fc_w | fm_V | fm_V**2]
    # fmb_ref   : (1, 1)           fc bias
    # label_ref : (B, 1)
    BL = idx_ref.shape[0]
    V2, D2 = emb_ref.shape
    V = V2 // 2
    KD2, F2 = cw_ref.shape
    K = KD2 // D2
    B = label_ref.shape[0]
    L = BL // B
    Lp = L - K + 1                       # valid conv positions per document
    Np = BL - K + 1                      # conv rows computed on the flat batch
    FMK = (fm_ref.shape[1] - 1) // 2

    # --- both embedding gathers in one MXU push -----------------------------
    # user ids hit columns [0, V) of the block-diag table, item ids [V, 2V).
    iota = jax.lax.broadcasted_iota(jnp.int32, (BL, V2), 1)
    onehot = ((iota == idx_ref[:, 0:1]) |
              (iota == idx_ref[:, 1:2] + V)).astype(jnp.float32)          # (BL, 2V)
    flat = jnp.dot(onehot, emb_ref[...],
                   preferred_element_type=jnp.float32)                    # (BL, 2D)

    # --- both convolutions in one MXU push -----------------------------------
    # im2col over the flattened batch; each k-chunk carries [user D | item D]
    # and the block-structured weight routes each half to its own filters.
    col = jnp.concatenate([flat[k:k + Np, :] for k in range(K)], axis=1)  # (Np, K*2D)
    conv = jnp.maximum(
        jnp.dot(col, cw_ref[...], preferred_element_type=jnp.float32)
        + cb_ref[...], 0.0)                                               # (Np, 2F)

    # Per-document max-pool; rows whose window crosses a document boundary
    # are simply never read.  (B is tiny; with large B use masked reshape.)
    pooled = jnp.concatenate(
        [jnp.max(conv[b * L:b * L + Lp, :], axis=0, keepdims=True)
         for b in range(B)], axis=0)                                      # (B, 2F)

    # --- both fc_linear layers in one MXU push -> x = [u_fea | i_fea] --------
    x = (jnp.dot(pooled, fw_ref[...], preferred_element_type=jnp.float32)
         + fb_ref[...])                                                   # (B, 2E)
    # TODO(synk): nn.Dropout omitted (identity in eval / deterministic forward).

    # --- FM head in one MXU push ---------------------------------------------
    lhs = jnp.concatenate([x, x * x], axis=0)                             # (2B, 2E)
    r = jnp.dot(lhs, fm_ref[...], preferred_element_type=jnp.float32)     # (2B, 1+2K)
    lin = r[0:B, 0:1] + fmb_ref[...]                                      # x @ fc_w + b
    xv = r[0:B, 1:1 + FMK]                                                # x @ V
    t2 = r[B:2 * B, 1 + FMK:1 + 2 * FMK]                                  # x^2 @ V^2
    fm = 0.5 * jnp.sum(xv * xv - t2, axis=1, keepdims=True) + lin         # (B, 1)

    pred_ref[...] = fm
    diff = fm - label_ref[...]
    sq = diff * diff
    rloss_ref[...] = sq                                                   # per-sample MSE
    mse_ref[...] = jnp.mean(sq).reshape(1, 1)                             # mean MSE


def deepconn_forward(params, user, item, label, user_doc, item_doc):
    # user/item are unused in this forward (free-embedding branch is commented
    # out in the reference module); dropout is identity in eval mode.
    del user, item
    B, L = user_doc.shape
    K, D, F, E = KERNEL_SIZE, WORD_DIM, FILTERS, EMB_DIM

    doc_idx = jnp.stack([user_doc.reshape(-1), item_doc.reshape(-1)],
                        axis=1).astype(jnp.int32)                         # (B*L, 2)

    # Block-diagonal / block-structured fused weights (tiny, built host-side).
    emb_blk = jnp.zeros((2 * VOCAB_SZ, 2 * D), jnp.float32)
    emb_blk = emb_blk.at[:VOCAB_SZ, :D].set(params["user_word_embs"])
    emb_blk = emb_blk.at[VOCAB_SZ:, D:].set(params["item_word_embs"])

    cw_blk = jnp.zeros((K, 2 * D, 2 * F), jnp.float32)
    cw_blk = cw_blk.at[:, :D, :F].set(params["user_cnn_w"])
    cw_blk = cw_blk.at[:, D:, F:].set(params["item_cnn_w"])
    cw_blk = cw_blk.reshape(K * 2 * D, 2 * F)
    cb = jnp.concatenate([params["user_cnn_b"], params["item_cnn_b"]], axis=1)

    fw_blk = jnp.zeros((2 * F, 2 * E), jnp.float32)
    fw_blk = fw_blk.at[:F, :E].set(params["user_fc_w"])
    fw_blk = fw_blk.at[F:, E:].set(params["item_fc_w"])
    fb = jnp.concatenate([params["user_fc_b"], params["item_fc_b"]], axis=1)

    fm_rhs = jnp.concatenate(
        [params["fc_w"], params["fm_V"], params["fm_V"] ** 2], axis=1)    # (2E, 1+2K)

    label2 = label.reshape(B, 1)

    vmem = pl.BlockSpec(memory_space=pltpu.MemorySpace.VMEM)
    pred, rloss, mse = pl.pallas_call(
        deepconn_fused_kernel,
        out_shape=(
            jax.ShapeDtypeStruct((B, 1), jnp.float32),   # prediction
            jax.ShapeDtypeStruct((B, 1), jnp.float32),   # per-sample MSE
            jax.ShapeDtypeStruct((1, 1), jnp.float32),   # mean MSE (obj loss)
        ),
        in_specs=[vmem] * 9,
        out_specs=(vmem, vmem, vmem),
    )(doc_idx, emb_blk, cw_blk, cb, fw_blk, fb, fm_rhs,
      params["fc_b"], label2)
    return mse[0, 0], rloss[:, 0], pred[:, 0]


# ---------------------------------------------------------------------------
# Parameter init (deterministic, mimics reset_para() distributions)
# ---------------------------------------------------------------------------
def init_params(key):
    ks = jax.random.split(key, 10)
    dim = EMB_DIM * 2

    def xavier_normal(k, shape, fan_in, fan_out):
        std = (2.0 / (fan_in + fan_out)) ** 0.5
        return std * jax.random.normal(k, shape, jnp.float32)

    params = {
        # word embeddings: xavier normal
        "user_word_embs": xavier_normal(ks[0], (VOCAB_SZ, WORD_DIM), VOCAB_SZ, WORD_DIM),
        "item_word_embs": xavier_normal(ks[1], (VOCAB_SZ, WORD_DIM), VOCAB_SZ, WORD_DIM),
        # conv weights stored as (K, D, F); xavier normal, bias = 0.1
        "user_cnn_w": xavier_normal(ks[2], (KERNEL_SIZE, WORD_DIM, FILTERS),
                                    KERNEL_SIZE * WORD_DIM, FILTERS),
        "item_cnn_w": xavier_normal(ks[3], (KERNEL_SIZE, WORD_DIM, FILTERS),
                                    KERNEL_SIZE * WORD_DIM, FILTERS),
        "user_cnn_b": jnp.full((1, FILTERS), 0.1, jnp.float32),
        "item_cnn_b": jnp.full((1, FILTERS), 0.1, jnp.float32),
        # fc linears stored as (F, E); uniform(-0.1, 0.1), bias = 0.1
        "user_fc_w": jax.random.uniform(ks[4], (FILTERS, EMB_DIM), jnp.float32, -0.1, 0.1),
        "item_fc_w": jax.random.uniform(ks[5], (FILTERS, EMB_DIM), jnp.float32, -0.1, 0.1),
        "user_fc_b": jnp.full((1, EMB_DIM), 0.1, jnp.float32),
        "item_fc_b": jnp.full((1, EMB_DIM), 0.1, jnp.float32),
        # FM head: fc (dim,1) uniform(-0.05,0.05), bias 0; fm_V uniform(-0.05,0.05)
        "fc_w": jax.random.uniform(ks[6], (dim, 1), jnp.float32, -0.05, 0.05),
        "fc_b": jnp.zeros((1, 1), jnp.float32),
        "fm_V": jax.random.uniform(ks[7], (dim, FM_K), jnp.float32, -0.05, 0.05),
    }
    return params


# ---------------------------------------------------------------------------
# Pure-JAX reference for verification
# ---------------------------------------------------------------------------
def deepconn_ref(params, user, item, label, user_doc, item_doc):
    def feat(doc, emb, cw, cb, fw, fb):
        d = jnp.take(emb, doc, axis=0)                               # (B, L, D)
        Lp = DOC_LEN - KERNEL_SIZE + 1
        acc = jnp.zeros((d.shape[0], Lp, FILTERS), jnp.float32)
        for k in range(KERNEL_SIZE):
            acc = acc + jnp.einsum("bld,df->blf", d[:, k:k + Lp, :], cw[k])
        conv = jnp.maximum(acc + cb[None], 0.0)
        pooled = jnp.max(conv, axis=1)
        return pooled @ fw + fb

    u = feat(user_doc, params["user_word_embs"], params["user_cnn_w"],
             params["user_cnn_b"], params["user_fc_w"], params["user_fc_b"])
    i = feat(item_doc, params["item_word_embs"], params["item_cnn_w"],
             params["item_cnn_b"], params["item_fc_w"], params["item_fc_b"])
    x = jnp.concatenate([u, i], axis=1)
    lin = x @ params["fc_w"] + params["fc_b"]
    t1 = (x @ params["fm_V"]) ** 2
    t2 = (x ** 2) @ (params["fm_V"] ** 2)
    fm = 0.5 * jnp.sum(t1 - t2, axis=1, keepdims=True) + lin
    pred = fm[:, 0]
    rating_loss = (pred - label) ** 2
    return jnp.mean(rating_loss), rating_loss, pred


# ---------------------------------------------------------------------------
if __name__ == "__main__":
    key = jax.random.PRNGKey(0)
    pkey, dkey1, dkey2, dkey3, dkey4, dkey5 = jax.random.split(key, 6)
    params = init_params(pkey)

    user = jax.random.randint(dkey1, (BATCH,), 0, NUM_USERS)
    item = jax.random.randint(dkey2, (BATCH,), 0, NUM_ITEMS)
    label = jax.random.uniform(dkey3, (BATCH,), jnp.float32, 1.0, 5.0)
    user_doc = jax.random.randint(dkey4, (BATCH, DOC_LEN), 0, VOCAB_SZ)
    item_doc = jax.random.randint(dkey5, (BATCH, DOC_LEN), 0, VOCAB_SZ)

    obj_loss, rating_loss, prediction = deepconn_forward(
        params, user, item, label, user_doc, item_doc)
    jax.block_until_ready((obj_loss, rating_loss, prediction))

    r_obj, r_rating, r_pred = deepconn_ref(
        params, user, item, label, user_doc, item_doc)
    assert jnp.allclose(prediction, r_pred, atol=1e-4), "prediction mismatch"
    assert jnp.allclose(rating_loss, r_rating, atol=1e-4), "rating_loss mismatch"
    assert jnp.allclose(obj_loss, r_obj, atol=1e-4), "obj_loss mismatch"

    print("KERNEL_OK")
</pallas_src>

<mosaic_0001>
module attributes {stable_mosaic.version = 11 : i64} {
  func.func @deepconn_fused_kernel(%arg0: memref<32x2xi32, #tpu.memory_space<vmem>>, %arg1: memref<128x64xf32, #tpu.memory_space<vmem>>, %arg2: memref<192x32xf32, #tpu.memory_space<vmem>>, %arg3: memref<1x32xf32, #tpu.memory_space<vmem>>, %arg4: memref<32x64xf32, #tpu.memory_space<vmem>>, %arg5: memref<1x64xf32, #tpu.memory_space<vmem>>, %arg6: memref<64x21xf32, #tpu.memory_space<vmem>>, %arg7: memref<1x1xf32, #tpu.memory_space<vmem>>, %arg8: memref<2x1xf32, #tpu.memory_space<vmem>>, %arg9: memref<2x1xf32, #tpu.memory_space<vmem>>, %arg10: memref<2x1xf32, #tpu.memory_space<vmem>>, %arg11: memref<1x1xf32, #tpu.memory_space<vmem>>) attributes {dimension_semantics = [], scalar_prefetch = 0 : i64, scratch_operands = 0 : i64, tpu.core_type = #tpu.core_type<tc>} {
    %0 = tpu.iota {dimensions = array<i32: 1>} : vector<32x128xi32>
    %c0 = arith.constant 0 : index
    %c0_0 = arith.constant 0 : index
    %1 = vector.load %arg0[%c0, %c0_0] : memref<32x2xi32, #tpu.memory_space<vmem>>, vector<32x1xi32>
    %2 = vector.broadcast %1 : vector<32x1xi32> to vector<32x128xi32>
    %3 = arith.cmpi eq, %0, %2 : vector<32x128xi32>
    %c0_1 = arith.constant 0 : index
    %c1 = arith.constant 1 : index
    %4 = vector.load %arg0[%c0_1, %c1] : memref<32x2xi32, #tpu.memory_space<vmem>>, vector<32x1xi32>
    %c64_i32 = arith.constant 64 : i32
    %5 = vector.broadcast %c64_i32 : i32 to vector<32x1xi32>
    %6 = arith.addi %4, %5 : vector<32x1xi32>
    %7 = vector.broadcast %6 : vector<32x1xi32> to vector<32x128xi32>
    %8 = arith.cmpi eq, %0, %7 : vector<32x128xi32>
    %9 = arith.ori %3, %8 : vector<32x128xi1>
    %10 = arith.extui %9 : vector<32x128xi1> to vector<32x128xi32>
    %11 = arith.sitofp %10 : vector<32x128xi32> to vector<32x128xf32>
    %c0_2 = arith.constant 0 : index
    %c0_3 = arith.constant 0 : index
    %12 = vector.load %arg1[%c0_2, %c0_3] : memref<128x64xf32, #tpu.memory_space<vmem>>, vector<128x64xf32>
    %cst = arith.constant dense<0.000000e+00> : vector<32x64xf32>
    %13 = tpu.matmul %11, %12, %cst {dimension_numbers = #tpu.dot_dimension_numbers<[1], [0], [0], [1], [0, 0, 1, 1], [], []>} : vector<32x128xf32>, vector<128x64xf32>, vector<32x64xf32> -> vector<32x64xf32>
    %14 = vector.extract_strided_slice %13 {offsets = [0, 0], sizes = [30, 64], strides = [1, 1]} : vector<32x64xf32> to vector<30x64xf32>
    %15 = vector.extract_strided_slice %13 {offsets = [1, 0], sizes = [30, 64], strides = [1, 1]} : vector<32x64xf32> to vector<30x64xf32>
    %16 = vector.extract_strided_slice %13 {offsets = [2, 0], sizes = [30, 64], strides = [1, 1]} : vector<32x64xf32> to vector<30x64xf32>
    %17 = tpu.concatenate %14, %15, %16 in 1 : vector<30x64xf32>, vector<30x64xf32>, vector<30x64xf32> -> vector<30x192xf32>
    %c0_4 = arith.constant 0 : index
    %c0_5 = arith.constant 0 : index
    %18 = vector.load %arg2[%c0_4, %c0_5] : memref<192x32xf32, #tpu.memory_space<vmem>>, vector<192x32xf32>
    %cst_6 = arith.constant dense<0.000000e+00> : vector<30x32xf32>
    %19 = tpu.matmul %17, %18, %cst_6 {dimension_numbers = #tpu.dot_dimension_numbers<[1], [0], [0], [1], [0, 0, 1, 1], [], []>} : vector<30x192xf32>, vector<192x32xf32>, vector<30x32xf32> -> vector<30x32xf32>
    %c0_7 = arith.constant 0 : index
    %c0_8 = arith.constant 0 : index
    %20 = vector.load %arg3[%c0_7, %c0_8] : memref<1x32xf32, #tpu.memory_space<vmem>>, vector<1x32xf32>
    %21 = vector.broadcast %20 : vector<1x32xf32> to vector<30x32xf32>
    %22 = arith.addf %19, %21 : vector<30x32xf32>
    %cst_9 = arith.constant 0.000000e+00 : f32
    %23 = vector.broadcast %cst_9 : f32 to vector<30x32xf32>
    %24 = arith.maximumf %22, %23 : vector<30x32xf32>
    %25 = vector.extract_strided_slice %24 {offsets = [0, 0], sizes = [14, 32], strides = [1, 1]} : vector<30x32xf32> to vector<14x32xf32>
    %cst_10 = arith.constant dense<0xFF800000> : vector<32xf32>
    %26 = vector.multi_reduction <maximumf>, %25, %cst_10 [0] : vector<14x32xf32> to vector<32xf32>
    %27 = vector.shape_cast %26 : vector<32xf32> to vector<1x32xf32>
    %28 = vector.extract_strided_slice %24 {offsets = [16, 0], sizes = [14, 32], strides = [1, 1]} : vector<30x32xf32> to vector<14x32xf32>
    %cst_11 = arith.constant dense<0xFF800000> : vector<32xf32>
    %29 = vector.multi_reduction <maximumf>, %28, %cst_11 [0] : vector<14x32xf32> to vector<32xf32>
    %30 = vector.shape_cast %29 : vector<32xf32> to vector<1x32xf32>
    %31 = tpu.concatenate %27, %30 in 0 : vector<1x32xf32>, vector<1x32xf32> -> vector<2x32xf32>
    %c0_12 = arith.constant 0 : index
    %c0_13 = arith.constant 0 : index
    %32 = vector.load %arg4[%c0_12, %c0_13] : memref<32x64xf32, #tpu.memory_space<vmem>>, vector<32x64xf32>
    %cst_14 = arith.constant dense<0.000000e+00> : vector<2x64xf32>
    %33 = tpu.matmul %31, %32, %cst_14 {dimension_numbers = #tpu.dot_dimension_numbers<[1], [0], [0], [1], [0, 0, 1, 1], [], []>} : vector<2x32xf32>, vector<32x64xf32>, vector<2x64xf32> -> vector<2x64xf32>
    %c0_15 = arith.constant 0 : index
    %c0_16 = arith.constant 0 : index
    %34 = vector.load %arg5[%c0_15, %c0_16] : memref<1x64xf32, #tpu.memory_space<vmem>>, vector<1x64xf32>
    %35 = vector.broadcast %34 : vector<1x64xf32> to vector<2x64xf32>
    %36 = arith.addf %33, %35 : vector<2x64xf32>
    %37 = arith.mulf %36, %36 : vector<2x64xf32>
    %38 = tpu.concatenate %36, %37 in 0 : vector<2x64xf32>, vector<2x64xf32> -> vector<4x64xf32>
    %c0_17 = arith.constant 0 : index
    %c0_18 = arith.constant 0 : index
    %39 = vector.load %arg6[%c0_17, %c0_18] : memref<64x21xf32, #tpu.memory_space<vmem>>, vector<64x21xf32>
    %cst_19 = arith.constant dense<0.000000e+00> : vector<4x21xf32>
    %40 = tpu.matmul %38, %39, %cst_19 {dimension_numbers = #tpu.dot_dimension_numbers<[1], [0], [0], [1], [0, 0, 1, 1], [], []>} : vector<4x64xf32>, vector<64x21xf32>, vector<4x21xf32> -> vector<4x21xf32>
    %41 = vector.extract_strided_slice %40 {offsets = [0, 0], sizes = [2, 1], strides = [1, 1]} : vector<4x21xf32> to vector<2x1xf32>
    %c0_20 = arith.constant 0 : index
    %c0_21 = arith.constant 0 : index
    %42 = vector.load %arg7[%c0_20, %c0_21] : memref<1x1xf32, #tpu.memory_space<vmem>>, vector<1x1xf32>
    %43 = vector.broadcast %42 : vector<1x1xf32> to vector<2x1xf32>
    %44 = arith.addf %41, %43 : vector<2x1xf32>
    %45 = vector.extract_strided_slice %40 {offsets = [0, 1], sizes = [2, 10], strides = [1, 1]} : vector<4x21xf32> to vector<2x10xf32>
    %46 = vector.extract_strided_slice %40 {offsets = [2, 11], sizes = [2, 10], strides = [1, 1]} : vector<4x21xf32> to vector<2x10xf32>
    %47 = arith.mulf %45, %45 : vector<2x10xf32>
    %48 = arith.subf %47, %46 : vector<2x10xf32>
    %cst_22 = arith.constant dense<0.000000e+00> : vector<2xf32>
    %49 = vector.multi_reduction <add>, %48, %cst_22 [1] : vector<2x10xf32> to vector<2xf32>
    %50 = vector.shape_cast %49 : vector<2xf32> to vector<2x1xf32>
    %cst_23 = arith.constant 5.000000e-01 : f32
    %51 = vector.broadcast %cst_23 : f32 to vector<2x1xf32>
    %52 = arith.mulf %51, %50 : vector<2x1xf32>
    %53 = arith.addf %52, %44 : vector<2x1xf32>
    %c0_24 = arith.constant 0 : index
    %c0_25 = arith.constant 0 : index
    %54 = vector.load %arg9[%c0_24, %c0_25] : memref<2x1xf32, #tpu.memory_space<vmem>>, vector<2x1xf32>
    tpu.vector_store %arg9[%c0_24, %c0_25], %53 {strides = array<i32>} : memref<2x1xf32, #tpu.memory_space<vmem>>, vector<2x1xf32>,
    %c0_26 = arith.constant 0 : index
    %c0_27 = arith.constant 0 : index
    %55 = vector.load %arg8[%c0_26, %c0_27] : memref<2x1xf32, #tpu.memory_space<vmem>>, vector<2x1xf32>
    %56 = arith.subf %53, %55 : vector<2x1xf32>
    %57 = arith.mulf %56, %56 : vector<2x1xf32>
    %c0_28 = arith.constant 0 : index
    %c0_29 = arith.constant 0 : index
    %58 = vector.load %arg10[%c0_28, %c0_29] : memref<2x1xf32, #tpu.memory_space<vmem>>, vector<2x1xf32>
    tpu.vector_store %arg10[%c0_28, %c0_29], %57 {strides = array<i32>} : memref<2x1xf32, #tpu.memory_space<vmem>>, vector<2x1xf32>,
    %59 = vector.shape_cast %57 : vector<2x1xf32> to vector<1x2x1xf32>
    %cst_30 = arith.constant dense<0.000000e+00> : vector<1xf32>
    %60 = vector.multi_reduction <add>, %59, %cst_30 [1, 2] : vector<1x2x1xf32> to vector<1xf32>
    %61 = vector.shape_cast %60 : vector<1xf32> to vector<1x1x1xf32>
    %62 = vector.extract %61[0, 0, 0] : f32 from vector<1x1x1xf32>
    %cst_31 = arith.constant 2.000000e+00 : f32
    %63 = arith.divf %62, %cst_31 : f32
    %64 = vector.broadcast %63 : f32 to vector<1x1xf32>
    %c0_32 = arith.constant 0 : index
    %c0_33 = arith.constant 0 : index
    %65 = vector.load %arg11[%c0_32, %c0_33] : memref<1x1xf32, #tpu.memory_space<vmem>>, vector<1x1xf32>
    tpu.vector_store %arg11[%c0_32, %c0_33], %64 {strides = array<i32>} : memref<1x1xf32, #tpu.memory_space<vmem>>, vector<1x1xf32>,
    return
  }
}

</mosaic_0001>

<bundles_post_ra>
// kernel: tpu_custom_call.1
= control target key start
LH: loop header
LB: loop body
LE: loop exit
PB: predicated region body
PF: predicated region fallthrough
CT: control target
= control target key end

     0   :  { %s1095_s0 = inlined_call_operand.vmem [shape: s32[32,2], index: 0, kind: input, shape index: {}]   ;;  %s1096_s1 = inlined_call_operand.vmem [shape: f32[128,64], index: 1, kind: input, shape index: {}]   ;;  %s1097_s2 = inlined_call_operand.vmem [shape: f32[192,32], index: 2, kind: input, shape index: {}]   ;;  %s1098_s3 = inlined_call_operand.vmem [shape: f32[1,32], index: 3, kind: input, shape index: {}]   ;;  %s1099_s4 = inlined_call_operand.vmem [shape: f32[32,64], index: 4, kind: input, shape index: {}]   ;;  %s1100_s5 = inlined_call_operand.vmem [shape: f32[1,64], index: 5, kind: input, shape index: {}]   ;;  %s1101_s6 = inlined_call_operand.vmem [shape: f32[64,21], index: 6, kind: input, shape index: {}]   ;;  %s1102_s7 = inlined_call_operand.<no memory space> [shape: f32[1,1], index: 7, kind: input, shape index: {}]   ;;  %s1103_s8 = inlined_call_operand.vmem [shape: f32[2,1], index: 8, kind: input, shape index: {}]   ;;  %s1104_s9 = inlined_call_operand.vmem [shape: f32[2,1], index: 9, kind: output, shape index: {0}]   ;;  %s1105_s10 = inlined_call_operand.vmem [shape: f32[2,1], index: 10, kind: output, shape index: {1}]   ;;  %s1106_s11 = inlined_call_operand.hbm [shape: f32[1,1], index: 11, kind: output, shape index: {2}]  }
   0x1   :  { %v17_v0 = vstv %s1102_s7 }
   0x2   :  { %18 = vst [vmem:[#allocation2] sm:$0x1] %v17_v0 }
   0x3   :  { %v41_v1 = vld [vmem:[%s1095_s0 + $0x8] sm:$0xff]  ;;  %v40_v2 = vld [vmem:[%s1095_s0] sm:$0xff]  ;;  %v777_v3 = vmov 0   ;;  %v107_v4 = vld [vmem:[%s1096_s1 + $0x78] sm:$0xff]  ;;  %v778_v9 = vmov 1  }
   0x4   :  { %752 = vset.pattern.permute.xlu1 %v777_v3  ;;  %750 = vset.pattern.permute.xlu0 %v777_v3  ;;  %v106_v5 = vld [vmem:[%s1096_s1 + $0x70] sm:$0xff]  ;;  %v61_v6 = vadd.s32 64, %v41_v1  ;;  %v60_v7 = vadd.s32 64, %v40_v2  ;;  %v105_v10 = vld [vmem:[%s1096_s1 + $0x68] sm:$0xff] }
   0x5   :  { %48 = vperm.xlu1 %752, %v41_v1   ;;  %45 = vperm.xlu0 %750, %v40_v2   ;;  %v42_v8 = vld [vmem:[%s1095_s0 + $0x10] sm:$0xff] }
   0x6   :  { %671 = vmatprep.subr.mxu0 %v107_v4 }
   0x7   :  { %672 = vmatpush3.msra.mxu0 %v107_v4 }
   0x8   :  { %673 = vmatprep.subr.mxu0 %v106_v5 }
   0x9   :  { %753 = vset.pattern.permute.xlu1 %v778_v9  ;;  %751 = vset.pattern.permute.xlu0 %v778_v9 }
   0xa   :  { %19 = vsyncpa [#allocation4], 0  ;;  %68 = vperm.xlu1 %753, %v61_v6   ;;  %65 = vperm.xlu0 %751, %v60_v7   ;;  %v62_v11 = vadd.s32 64, %v42_v8  ;;  %v43_v12 = vld [vmem:[%s1095_s0 + $0x18] sm:$0xff]  ;;  %v104_v13 = vld [vmem:[%s1096_s1 + $0x60] sm:$0xff]  ;;  %v38_v27 = vlaneseq  ;;  %v779_v33 = vmov 1.0  }
   0xb   :  { %674 = vmatpush3.msra.mxu0 %v106_v5  ;;  %v63_v14 = vadd.s32 64, %v43_v12  ;;  %v103_v15 = vld [vmem:[%s1096_s1 + $0x58] sm:$0xff]  ;;  %v102_v16 = vld [vmem:[%s1096_s1 + $0x50] sm:$0xff]  ;;  %v101_v17 = vld [vmem:[%s1096_s1 + $0x48] sm:$0xff]  ;;  %v780_v39 = vmov 0.0   ;;  %vm217_vm12 = vcmask 1045504  }
   0xc   :  { %675 = vmatprep.subr.mxu0 %v105_v10  ;;  %v100_v18 = vld [vmem:[%s1096_s1 + $0x40] sm:$0xff]  ;;  %v99_v19 = vld [vmem:[%s1096_s1 + $0x38] sm:$0xff]  ;;  %v98_v20 = vld [vmem:[%s1096_s1 + $0x30] sm:$0xff]  ;;  %v39_v30 = vand.u32 127, %v38_v27  ;;  %269 = vmatprep.subr.mxu1 %v780_v39  ;;  %vm225_vm13 = vcmask 523264   ;;  %vm197_vm14 = vcmask 1046528  }
   0xd   :  { %676 = vmatpush3.msra.mxu0 %v105_v10  ;;  %v97_v21 = vld [vmem:[%s1096_s1 + $0x28] sm:$0xff]  ;;  %v96_v22 = vld [vmem:[%s1096_s1 + $0x20] sm:$0xff]  ;;  %v95_v23 = vld [vmem:[%s1096_s1 + $0x18] sm:$0xff]  ;;  %s781_s20 = smov 64   ;;  %vm782_vm15 = vmmov 0   ;;  %s783_s23 = smov 118  }
   0xe   :  { %754 = vset.pattern.permute.xlu1 %v777_v3  ;;  %71 = vperm.xlu0 %751, %v62_v11   ;;  %v94_v24 = vld [vmem:[%s1096_s1 + $0x10] sm:$0xff]  ;;  %v93_v25 = vld [vmem:[%s1096_s1 + $0x8] sm:$0xff]  ;;  %v92_v26 = vld [vmem:[%s1096_s1] sm:$0xff] }
   0xf   :  { %51 = vperm.xlu1 %754, %v42_v8   ;;  %677 = vmatprep.subr.mxu0 %v104_v13  ;;  %v245_v38 = vld [vmem:[%s1097_s2 + $0x78] sm:$0xff]  ;;  %v244_v40 = vld [vmem:[%s1097_s2 + $0x70] sm:$0xff]  ;;  %v243_v41 = vld [vmem:[%s1097_s2 + $0x68] sm:$0xff] }
  0x10   :  { %678 = vmatpush3.msra.mxu0 %v104_v13  ;;  %270 = vmatpush1.msra.mxu1 %v245_v38  ;;  %v242_v42 = vld [vmem:[%s1097_s2 + $0x60] sm:$0xff]  ;;  %v241_v43 = vld [vmem:[%s1097_s2 + $0x58] sm:$0xff]  ;;  %v240_v44 = vld [vmem:[%s1097_s2 + $0x50] sm:$0xff] }
  0x11   :  { %679 = vmatprep.subr.mxu0 %v103_v15  ;;  %271 = vmatprep.subr.mxu1 %v780_v39  ;;  %v239_v45 = vld [vmem:[%s1097_s2 + $0x48] sm:$0xff]  ;;  %v238_v46 = vld [vmem:[%s1097_s2 + $0x40] sm:$0xff]  ;;  %v237_v47 = vld [vmem:[%s1097_s2 + $0x38] sm:$0xff] }
  0x12   :  { %74 = vperm.xlu0 %751, %v63_v14   ;;  %680 = vmatpush3.msra.mxu0 %v103_v15  ;;  %v236_v48 = vld [vmem:[%s1097_s2 + $0x30] sm:$0xff]  ;;  %v235_v49 = vld [vmem:[%s1097_s2 + $0x28] sm:$0xff]  ;;  %v234_v50 = vld [vmem:[%s1097_s2 + $0x20] sm:$0xff] }
  0x13   :  { %54 = vperm.xlu1 %754, %v43_v12   ;;  %681 = vmatprep.subr.mxu0 %v102_v16  ;;  %v233_v51 = vld [vmem:[%s1097_s2 + $0x18] sm:$0xff]  ;;  %v232_v52 = vld [vmem:[%s1097_s2 + $0x10] sm:$0xff]  ;;  %v231_v53 = vld [vmem:[%s1097_s2 + $0x8] sm:$0xff] }
  0x14   :  { %682 = vmatpush3.msra.mxu0 %v102_v16  ;;  %272 = vmatpush1.msra.mxu1 %v244_v40  ;;  %v230_v54 = vld [vmem:[%s1097_s2] sm:$0xff]  ;;  %v253_v55 = vld [vmem:[%s1097_s2 + $0xb8] sm:$0xff]  ;;  %v252_v56 = vld [vmem:[%s1097_s2 + $0xb0] sm:$0xff] }
  0x15   :  { %683 = vmatprep.subr.mxu0 %v101_v17  ;;  %273 = vmatprep.subr.mxu1 %v780_v39  ;;  %v251_v57 = vld [vmem:[%s1097_s2 + $0xa8] sm:$0xff]  ;;  %v250_v58 = vld [vmem:[%s1097_s2 + $0xa0] sm:$0xff]  ;;  %v249_v59 = vld [vmem:[%s1097_s2 + $0x98] sm:$0xff] }
  0x16   :  { %684 = vmatpush3.msra.mxu0 %v101_v17  ;;  %274 = vmatpush1.msra.mxu1 %v243_v41  ;;  %v248_v60 = vld [vmem:[%s1097_s2 + $0x90] sm:$0xff]  ;;  %v247_v61 = vld [vmem:[%s1097_s2 + $0x88] sm:$0xff]  ;;  %v246_v62 = vld [vmem:[%s1097_s2 + $0x80] sm:$0xff] }
  0x17   :  { %685 = vmatprep.subr.mxu0 %v100_v18  ;;  %275 = vmatprep.subr.mxu1 %v780_v39  ;;  %v381_v27 = vld [vmem:[%s1099_s4 + $0x8] sm:$0xff] }
  0x18   :  { %686 = vmatpush3.msra.mxu0 %v100_v18  ;;  %276 = vmatpush1.msra.mxu1 %v242_v42 }
  0x19   :  { %687 = vmatprep.subr.mxu0 %v99_v19  ;;  %277 = vmatprep.subr.mxu1 %v780_v39 }
  0x1a   :  { %688 = vmatpush3.msra.mxu0 %v99_v19  ;;  %278 = vmatpush1.msra.mxu1 %v241_v43 }
  0x1b   :  { %689 = vmatprep.subr.mxu0 %v98_v20  ;;  %279 = vmatprep.subr.mxu1 %v780_v39 }
  0x1c   :  { %690 = vmatpush3.msra.mxu0 %v98_v20  ;;  %280 = vmatpush1.msra.mxu1 %v240_v44 }
  0x1d   :  { %691 = vmatprep.subr.mxu0 %v97_v21  ;;  %281 = vmatprep.subr.mxu1 %v780_v39 }
  0x1e   :  { %692 = vmatpush3.msra.mxu0 %v97_v21  ;;  %282 = vmatpush1.msra.mxu1 %v239_v45 }
  0x1f   :  { %693 = vmatprep.subr.mxu0 %v96_v22  ;;  %283 = vmatprep.subr.mxu1 %v780_v39 }
  0x20   :  { %694 = vmatpush3.msra.mxu0 %v96_v22  ;;  %284 = vmatpush1.msra.mxu1 %v238_v46 }
  0x21   :  { %695 = vmatprep.subr.mxu0 %v95_v23  ;;  %285 = vmatprep.subr.mxu1 %v780_v39 }
  0x22   :  { %696 = vmatpush3.msra.mxu0 %v95_v23  ;;  %286 = vmatpush1.msra.mxu1 %v237_v47 }
  0x23   :  { %697 = vmatprep.subr.mxu0 %v94_v24  ;;  %287 = vmatprep.subr.mxu1 %v780_v39 }
  0x24   :  { %698 = vmatpush3.msra.mxu0 %v94_v24  ;;  %288 = vmatpush1.msra.mxu1 %v236_v48 }
  0x25   :  { %699 = vmatprep.subr.mxu0 %v93_v25  ;;  %289 = vmatprep.subr.mxu1 %v780_v39 }
  0x26   :  { %700 = vmatpush3.msra.mxu0 %v93_v25  ;;  %290 = vmatpush1.msra.mxu1 %v235_v49  ;;  %v383_v25 = vld [vmem:[%s1099_s4 + $0x18] sm:$0xff] }
  0x27   :  { %701 = vmatprep.subr.mxu0 %v92_v26  ;;  %291 = vmatprep.subr.mxu1 %v780_v39 }
  0x28   :  { %702 = vmatpush3.msra.mxu0 %v92_v26  ;;  %292 = vmatpush1.msra.mxu1 %v234_v50  ;;  %v382_v26 = vld [vmem:[%s1099_s4 + $0x10] sm:$0xff] }
  0x29   :  { %709 = vmatprep.subr.mxu0 %v780_v39  ;;  %293 = vmatprep.subr.mxu1 %v780_v39 }
  0x2a   :  { %294 = vmatpush1.msra.mxu1 %v233_v51 }
  0x2b   :  { %295 = vmatprep.subr.mxu1 %v780_v39 }
  0x2c   :  { %296 = vmatpush1.msra.mxu1 %v232_v52 }
  0x2d   :  { %297 = vmatprep.subr.mxu1 %v780_v39 }
  0x2e   :  { %298 = vmatpush1.msra.mxu1 %v231_v53 }
  0x2f   :  { %299 = vmatprep.subr.mxu1 %v780_v39 }
  0x30   :  { %300 = vmatpush1.msra.mxu1 %v230_v54 }
  0x31   :  { %317 = vmatprep.subr.mxu1 %v780_v39 }
  0x32   :  { %318 = vmatpush2.msra.mxu1 %v253_v55 }
  0x33   :  { %319 = vmatprep.subr.mxu1 %v780_v39 }
  0x34   :  { %320 = vmatpush2.msra.mxu1 %v252_v56 }
  0x35   :  { %321 = vmatprep.subr.mxu1 %v780_v39 }
  0x36   :  { %322 = vmatpush2.msra.mxu1 %v251_v57 }
  0x37   :  { %323 = vmatprep.subr.mxu1 %v780_v39 }
  0x38   :  { %324 = vmatpush2.msra.mxu1 %v250_v58 }
  0x39   :  { %325 = vmatprep.subr.mxu1 %v780_v39 }
  0x3a   :  { %326 = vmatpush2.msra.mxu1 %v249_v59 }
  0x3b   :  { %327 = vmatprep.subr.mxu1 %v780_v39 }
  0x3c   :  { %328 = vmatpush2.msra.mxu1 %v248_v60 }
  0x3d   :  { %329 = vmatprep.subr.mxu1 %v780_v39 }
  0x3e   :  { %330 = vmatpush2.msra.mxu1 %v247_v61 }
  0x3f   :  { %331 = vmatprep.subr.mxu1 %v780_v39 }
  0x40   :  { %332 = vmatpush2.msra.mxu1 %v246_v62 }
  0x80   :  { %v49_v28 = vpop.permute.xlu1 %48  ;;  %v46_v29 = vpop.permute.xlu0 %45 }
  0x81   :  { %vm57_vm0 = vcmp.eq.s32.totalorder %v39_v30, %v49_v28  ;;  %vm56_vm3 = vcmp.eq.s32.totalorder %v39_v30, %v46_v29  ;;  %v380_v28 = vld [vmem:[%s1099_s4] sm:$0xff] }
  0x85   :  { %v69_v31 = vpop.permute.xlu1 %68  ;;  %v66_v32 = vpop.permute.xlu0 %65 }
  0x86   :  { %vm77_vm1 = vcmp.eq.s32.totalorder %v39_v30, %v69_v31  ;;  %vm76_vm2 = vcmp.eq.s32.totalorder %v39_v30, %v66_v32 }
  0x87   :  { %vm81_vm4 = vmor %vm57_vm0, %vm77_vm1  ;;  %vm358_vm0 = vcmask 261120   ;;  %vm360_vm1 = vcmask 259072  }
  0x88   :  { %vm80_vm5 = vmor %vm56_vm3, %vm76_vm2  ;;  %vm378_vm2 = vcmask 1040384   ;;  %vm468_vm3 = vcmask 1041408  }
  0x89   :  { %703 = vmatprep.mubr.msk.f32.mxu0 %vm80_vm5, %v779_v33  ;;  %v72_v34 = vpop.permute.xlu0 %71  ;;  %vm576_vm5 = vcmask 1024  }
  0x8a   :  { %vm78_vm6 = vcmp.eq.s32.totalorder %v39_v30, %v72_v34  ;;  %704 = vmatmul.mubr.msk.f32.vlgmr.msra.gmra.mxu0 %vm81_vm4, %v779_v33  ;;  %v52_v35 = vpop.permute.xlu1 %51  ;;  %vm570_vm4 = vcmask 74752  }
  0x8b   :  { %vm58_vm7 = vcmp.eq.s32.totalorder %v39_v30, %v52_v35  ;;  %710 = vmatpush3.msra.mxu0 %v383_v25 }
  0x8c   :  { %vm82_vm8 = vmor %vm58_vm7, %vm78_vm6  ;;  %711 = vmatprep.subr.mxu0 %v780_v39  ;;  %vm596_vm6 = vcmask 0  }
  0x8d   :  { %v75_v36 = vpop.permute.xlu0 %74  ;;  %706 = vmatprep.mubr.msk.f32.mxu0 %vm82_vm8, %v779_v33  ;;  %712 = vmatpush3.msra.mxu0 %v382_v26 }
  0x8e   :  { %vm79_vm9 = vcmp.eq.s32.totalorder %v39_v30, %v75_v36  ;;  %v55_v37 = vpop.permute.xlu1 %54  ;;  %713 = vmatprep.subr.mxu0 %v780_v39 }
  0x8f   :  { %vm59_vm10 = vcmp.eq.s32.totalorder %v39_v30, %v55_v37  ;;  %714 = vmatpush3.msra.mxu0 %v381_v27  ;;  %v628_v30 = vld [vmem:[%s1098_s3] ss:$0 sm:$0xff] }
  0x90   :  { %vm83_vm11 = vmor %vm59_vm10, %vm79_vm9  ;;  %715 = vmatprep.subr.mxu0 %v780_v39 }
  0x91   :  { %707 = vmatmul.mubr.msk.f32.gmra.mxu0 %vm83_vm11, %v779_v33 }
  0x92   :  { %717 = vmatprep.mubr.msk.f32.mxu0 %vm782_vm15, %v780_v39  ;;  %716 = vmatpush3.msra.mxu0 %v380_v28  ;;  %v578_v28 = vld [vmem:[%s1103_s8] sm:$0x3]  ;;  %s785_s8 = smov [#allocation3]  }
  0x93   :  { %720 = vmatprep.subr.mxu0 %v780_v39  ;;  %s608_s28 = sshll.u32 %s785_s8, 4  ;;  %s609_s28 = int_to_ptr.vmem [resolvable:$true] %s608_s28 }
  0x94   :  { %p760_p1 = scmp.lt.s32.totalorder %s609_s28, %s609_s28 }
 0x14a   :  { %v705_v63 = vpop.f32.mrf.mxu0 }
 0x14b   :  { %v199_v1 = vrot.slane %v705_v63, 1  ;;  %v219_v2 = vrot.slane %v705_v63, 2 }
 0x14c   :  { %v174_v0 = vpop.f32.mrf.mxu0 }
 0x14d   :  { %v198_v3 = vrot.slane %v174_v0, 1  ;;  %v218_v4 = vrot.slane %v174_v0, 2 }
 0x14f   :  { %v220_v5 = vsel %vm217_vm12, %v218_v4, %v219_v2  ;;  %v200_v6 = vsel %vm197_vm14, %v198_v3, %v199_v1  ;;  %v476_v3 = vld [vmem:[%s1101_s6 + $0x30] sm:$0xff]  ;;  %v475_v4 = vld [vmem:[%s1101_s6 + $0x28] sm:$0xff] }
 0x150   :  { %629 = vmatprep.mubr.msk.f32.mxu1 %vm225_vm13, %v220_v5  ;;  %205 = vrot.lane.b32.xlu1 %v200_v6, %s781_s20  ;;  %v474_v5 = vld [vmem:[%s1101_s6 + $0x20] sm:$0xff]  ;;  %v473_v6 = vld [vmem:[%s1101_s6 + $0x18] sm:$0xff] }
 0x151   :  { %v708_v7 = vpop.f32.mrf.mxu0 }
 0x152   :  { %v203_v9 = vrot.slane %v708_v7, 1  ;;  %v223_v17 = vrot.slane %v708_v7, 2 }
 0x153   :  { %v184_v8 = vpop.f32.mrf.mxu0 }
 0x154   :  { %v201_v10 = vrot.slane %v184_v8, 1  ;;  %v221_v11 = vrot.slane %v184_v8, 2 }
 0x156   :  { %v204_v12 = vsel %vm197_vm14, %v201_v10, %v203_v9  ;;  %v202_v13 = vsel %vm197_vm14, %v199_v1, %v201_v10  ;;  %v222_v14 = vsel %vm217_vm12, %v219_v2, %v221_v11  ;;  %v224_v21 = vsel %vm217_vm12, %v221_v11, %v223_v17  ;;  %v477_v1 = vld [vmem:[%s1101_s6 + $0x38] sm:$0xff]  ;;  %v633_v10 = vld [vmem:[%s1100_s5] ss:$0 sm:$0xff] }
 0x157   :  { %209 = vrot.lane.b32.xlu1 %v204_v12, %s781_s20  ;;  %207 = vrot.lane.b32.xlu0 %v202_v13, %s781_s20 }
 0x15b   :  { %211 = vrot.lane.b32.xlu0 %v203_v9, %s781_s20  ;;  %v470_v9 = vld [vmem:[%s1101_s6] sm:$0xff] }
 0x1c2   :  { %v206_v15 = vpop.permute.xlu1 %205 }
 0x1c3   :  { %v226_v16 = vsel %vm225_vm13, %v174_v0, %v206_v15 }
 0x1c4   :  { %334 = vmatmul.mubr.f32.vlgmr.msra.gmra.mxu1 %v226_v16 }
 0x1c5   :  { %630 = vmatprep.mubr.msk.f32.mxu1 %vm225_vm13, %v222_v14 }
 0x1c9   :  { %v208_v18 = vpop.permute.xlu0 %207  ;;  %v210_v20 = vpop.permute.xlu1 %209 }
 0x1ca   :  { %v227_v19 = vsel %vm225_vm13, %v705_v63, %v208_v18  ;;  %v228_v22 = vsel %vm225_vm13, %v184_v8, %v210_v20  ;;  %v471_v8 = vld [vmem:[%s1101_s6 + $0x8] sm:$0xff] }
 0x1cb   :  { %339 = vmatmul.mubr.f32.gmra.mxu1 %v227_v19 }
 0x1cc   :  { %631 = vmatprep.mubr.msk.f32.mxu1 %vm225_vm13, %v224_v21 }
 0x1cd   :  { %v212_v23 = vpop.permute.xlu0 %211 }
 0x1ce   :  { %v229_v24 = vsel %vm225_vm13, %v708_v7, %v212_v23  ;;  %v472_v7 = vld [vmem:[%s1101_s6 + $0x10] sm:$0xff]  ;;  %s784_s6 = smov 127  }
 0x1cf   :  { %344 = vmatmul.mubr.f32.gmra.mxu1 %v228_v22 }
 0x1d0   :  { %632 = vmatprep.mubr.msk.f32.mxu1 %vm225_vm13, %v223_v17 }
 0x1d3   :  { %349 = vmatmul.mubr.f32.gmra.mxu1 %v229_v24  ;;  %v636_v24 = vld [vmem:[#allocation2] ss:$0 sm:$0xff] }
 0x284   :  { %v335_v29 = vpop.f32.mrf.mxu1 }
 0x285   :  { %v336_v32 = vadd.f32 %v628_v30, %v335_v29 }
 0x286   :  { %v337_v31 = vpop.f32.mrf.mxu1 }
 0x287   :  { %v354_v34 = vmax.f32 %v336_v32, 0.0 }
 0x289   :  { %v359_v40 = vsel %vm358_vm0, %v354_v34, -inf }
 0x28b   :  { %v340_v33 = vpop.f32.mrf.mxu1 }
 0x28c   :  { %v341_v35 = vadd.f32 %v628_v30, %v340_v33 }
 0x28d   :  { %v342_v36 = vpop.f32.mrf.mxu1 }
 0x28e   :  { %v355_v37 = vmax.f32 %v341_v35, 0.0 }
 0x28f   :  { %v345_v38 = vpop.f32.mrf.mxu1 }
 0x290   :  { %v361_v41 = vsel %vm360_vm1, %v355_v37, -inf  ;;  %v346_v42 = vadd.f32 %v628_v30, %v345_v38 }
 0x291   :  { %v362_v43 = vmax.f32 %v359_v40, %v361_v41  ;;  %v347_v44 = vpop.f32.mrf.mxu1 }
 0x292   :  { %v356_v47 = vmax.f32 %v346_v42, 0.0 }
 0x293   :  { %v363_v45 = vrot.slane %v362_v43, 4  ;;  %v350_v46 = vpop.f32.mrf.mxu1 }
 0x294   :  { %v351_v48 = vadd.f32 %v628_v30, %v350_v46  ;;  %v369_v52 = vsel %vm358_vm0, %v356_v47, -inf }
 0x295   :  { %v364_v49 = vmax.f32 %v362_v43, %v363_v45  ;;  %v352_v50 = vpop.f32.mrf.mxu1 }
 0x296   :  { %v357_v51 = vmax.f32 %v351_v48, 0.0 }
 0x297   :  { %v365_v54 = vrot.slane %v364_v49, 2 }
 0x298   :  { %v370_v53 = vsel %vm360_vm1, %v357_v51, -inf }
 0x299   :  { %v371_v55 = vmax.f32 %v369_v52, %v370_v53  ;;  %v366_v57 = vmax.f32 %v364_v49, %v365_v54 }
 0x29b   :  { %v372_v56 = vrot.slane %v371_v55, 4  ;;  %v367_v60 = vrot.slane %v366_v57, 1 }
 0x29d   :  { %v373_v58 = vmax.f32 %v371_v55, %v372_v56  ;;  %v368_v63 = vmax.f32 %v366_v57, %v367_v60 }
 0x29f   :  { %v374_v59 = vrot.slane %v373_v58, 2 }
 0x2a1   :  { %v375_v61 = vmax.f32 %v373_v58, %v374_v59 }
 0x2a3   :  { %v376_v62 = vrot.slane %v375_v61, 1 }
 0x2a5   :  { %v377_v0 = vmax.f32 %v375_v61, %v376_v62 }
 0x2a7   :  { %v379_v2 = vsel %vm378_vm2, %v368_v63, %v377_v0 }
 0x2a8   :  { %718 = vmatmul.mubr.msk.f32.vlgmr.msra.gmra.mxu0 %vm358_vm0, %v379_v2 }
 0x2a9   :  { %721 = vmatpush3.msra.mxu0 %v477_v1  ;;  %736 = vmatprep.mubr.msk.f32.mxu0 %vm782_vm15, %v780_v39 }
 0x2aa   :  { %722 = vmatprep.subr.mxu0 %v780_v39 }
 0x2ab   :  { %723 = vmatpush3.msra.mxu0 %v476_v3 }
 0x2ac   :  { %724 = vmatprep.subr.mxu0 %v780_v39 }
 0x2ad   :  { %725 = vmatpush3.msra.mxu0 %v475_v4 }
 0x2ae   :  { %726 = vmatprep.subr.mxu0 %v780_v39 }
 0x2af   :  { %727 = vmatpush3.msra.mxu0 %v474_v5 }
 0x2b0   :  { %728 = vmatprep.subr.mxu0 %v780_v39 }
 0x2b1   :  { %729 = vmatpush3.msra.mxu0 %v473_v6 }
 0x2b2   :  { %730 = vmatprep.subr.mxu0 %v780_v39 }
 0x2b3   :  { %731 = vmatpush3.msra.mxu0 %v472_v7 }
 0x2b4   :  { %732 = vmatprep.subr.mxu0 %v780_v39 }
 0x2b5   :  { %733 = vmatpush3.msra.mxu0 %v471_v8 }
 0x2b6   :  { %734 = vmatprep.subr.mxu0 %v780_v39 }
 0x2b7   :  { %735 = vmatpush3.msra.mxu0 %v470_v9 }
 0x368   :  { %v460_v11 = vpop.f32.mrf.mxu0 }
 0x369   :  { %v461_v12 = vadd.f32 %v633_v10, %v460_v11 }
 0x36a   :  { %v719_v13 = vpop.f32.mrf.mxu0 }
 0x36b   :  { %v464_v14 = vmul.f32 %v461_v12, %v461_v12 }
 0x36d   :  { %v466_v15 = vrot.slane %v464_v14, 6 }
 0x36f   :  { %v469_v16 = vsel %vm468_vm3, %v461_v12, %v466_v15 }
 0x370   :  { %737 = vmatmul.mubr.msk.f32.vlgmr.msra.gmra.mxu0 %vm225_vm13, %v469_v16 }
 0x430   :  { %v547_v17 = vpop.f32.mrf.mxu0 }
 0x431   :  { %v561_v39 = vrot.slane %v547_v17, 2  ;;  %v559_v19 = vmul.f32 %v547_v17, %v547_v17  ;;  %v558_v26 = vadd.f32 %v636_v24, %v547_v17 }
 0x432   :  { %v738_v18 = vpop.f32.mrf.mxu0 }
 0x433   :  { %562 = vrot.lane.b32.xlu1 %v561_v39, %s783_s23 }
 0x4a5   :  { %v563_v20 = vpop.permute.xlu1 %562 }
 0x4a6   :  { %v565_v21 = vsub.f32 %v559_v19, %v563_v20 }
 0x4a8   :  { %567 = vrot.lane.b32.xlu0 %v565_v21, %s784_s6 }
 0x51a   :  { %v568_v22 = vpop.permute.xlu0 %567 }
 0x51b   :  { %v571_v23 = vsel %vm570_vm4, %v568_v22, 0.0 }
 0x51c   :  { %572 = vadd.xlane.f32.xlu1 %v571_v23 }
 0x5a5   :  { %v573_v25 = vpop.xlane.xlu1 %572 }
 0x5a6   :  { %v574_v27 = vmul.f32 0.5, %v573_v25 }
 0x5a8   :  { %v575_v29 = vadd.f32 %v574_v27, %v558_v26 }
 0x5aa   :  { %v579_v30 = vsub.f32 %v575_v29, %v578_v28  ;;  %577 = vst.msk [vmem:[%s1104_s9] sm:$0x3] %vm576_vm5, %v575_v29  ;;  %s755_s9 = scalar_lea.vmem %s609_s28, 16 }
 0x5ab   :  { %p756_p0 = scmp.ne.s32.totalorder %s609_s28, %s755_s9 }
 0x5ac   :  { %v580_v31 = vmul.f32 %v579_v30, %v579_v30 }
 0x5ae   :  { %v582_v32 = vsel %vm576_vm5, %v580_v31, 0.0  ;;  %581 = vst.msk [vmem:[%s1105_s10] sm:$0x3] %vm576_vm5, %v580_v31  ;;  %s759_s10 = scalar_lea.vmem %s609_s28, 32 }
 0x5af   :  { %583 = vadd.xlane.f32.xlu0 %v582_v32  ;;  %p761_p2 = scmp.lt.s32.totalorder %s759_s10, %s755_s9 }
 0x5b1   :  { %p762_p3 = por %p761_p2, %p760_p1 }
 0x5b3   :  { %p763_p4 = pnand %p762_p3, %p756_p0 }
 0x638   :  { %v584_v33 = vpop.xlane.xlu0 %583 }
 0x639   :  { %v585_v34 = vrot.slane %v584_v33, 4 }
 0x63b   :  { %v586_v35 = vadd.f32 %v585_v34, %v584_v33 }
 0x63d   :  { %v587_v36 = vrot.slane %v586_v35, 2 }
 0x63f   :  { %v588_v37 = vadd.f32 %v587_v36, %v586_v35 }
 0x641   :  { %v589_v38 = vrot.slane %v588_v37, 1 }
 0x643   :  { %v590_v40 = vadd.f32 %v589_v38, %v588_v37 }
 0x645   :  { %739 = vpush %v590_v40 }
 0x676   :  { %s740_s3 = spop %739 }
 0x677   :  { %s594_s4 = smul.f32 0.5, %s740_s3 }
 0x679   :  { %v595_v41 = vstv %s594_s4 }
 0x67a   :  { %597 = vst.msk [vmem:[#allocation3] sm:$0x1] %vm596_vm6, %v595_v41 }
 0x67b   :  { %766 = shalt.err (!%p763_p4)
}
 0x67c   :  { %611 = dma.vmem_to_hbm [thread:$0]  %s609_s28, 16, %s1106_s11, [#allocation4]  }
 0x67d   :  { %775 = dma.done.wait [#allocation4], 16  }
 0x67e   :  { %776 = vsyncadd [#allocation4], 4294967280 }
 0x67f   :  { %619 = vsyncpa [#allocation4], 1 }

</bundles_post_ra>
